<compile_context>
chip_gen: v6e
topology: v6e:2x2x1
jax: 0.10.0
libtpu: 0.0.40
codegen_flags: <defaults>
</compile_context>

<pallas_src>
import functools

import jax
import jax.numpy as jnp
from jax.experimental import pallas as pl
from jax.experimental.pallas import tpu as pltpu

MLP_HIDDEN = 128
DEFAULT_VMEM_LIMIT = 48 * 1024 * 1024  # <= v7x 64 MiB physical; > v5e 16 MiB default


# ----------------------------------------------------------------------------
# One-shot conditioning MLP kernel (runs once per call, grid-less).
# ----------------------------------------------------------------------------
def film_mlp_kernel(x_ref, w1_ref, b1_ref, w2_ref, b2_ref,
                    w3g_ref, b3g_ref, w3b_ref, b3b_ref, g_ref, beta_ref):
    x = x_ref[...]                                                         # (B, H)
    h1 = jnp.maximum(
        jnp.dot(x, w1_ref[...], preferred_element_type=jnp.float32) + b1_ref[...], 0.0)
    h2 = jnp.maximum(
        jnp.dot(h1, w2_ref[...], preferred_element_type=jnp.float32) + b2_ref[...], 0.0)
    gamma = jnp.dot(h2, w3g_ref[...], preferred_element_type=jnp.float32) + b3g_ref[...]
    beta = jnp.dot(h2, w3b_ref[...], preferred_element_type=jnp.float32) + b3b_ref[...]
    g_ref[...] = gamma + 1.0          # pre-add the +1 so the streaming kernel is f*g+b
    beta_ref[...] = beta


def _film_mlp(X, params, H):
    B = X.shape[0]
    w1 = params["w1"]
    b1 = params["b1"].reshape(1, MLP_HIDDEN)
    w2 = params["w2"]
    b2 = params["b2"].reshape(1, MLP_HIDDEN)
    w3g = params["w3_gamma"]
    b3g = params["b3_gamma"].reshape(1, H)
    w3b = params["w3_beta"]
    b3b = params["b3_beta"].reshape(1, H)
    g, beta = pl.pallas_call(
        film_mlp_kernel,
        out_shape=(jax.ShapeDtypeStruct((B, H), jnp.float32),
                   jax.ShapeDtypeStruct((B, H), jnp.float32)),
    )(X, w1, b1, w2, b2, w3g, b3g, w3b, b3b)
    return g, beta


# ----------------------------------------------------------------------------
# Streaming FiLM apply kernel: out = F * (1 + gamma) + beta, lane-dense layout.
# ----------------------------------------------------------------------------
def film_apply_kernel(f_ref, g_ref, b_ref, o_ref):
    # f_ref: (Tt, B*H); g_ref / b_ref: (1, B*H) -> broadcast over the T tile.
    o_ref[...] = (f_ref[...] * g_ref[...] + b_ref[...]).astype(o_ref.dtype)


def _pick_t_tile(T, BH, *, vmem_limit_bytes, dtype_bytes=4):
    """T rows per block, accounting for lane padding and 2x(in+out) buffering."""
    # Per-row footprint of one (Tt, BH) block: minor dim padded to 128 lanes.
    padded_row_bytes = pl.cdiv(BH, 128) * 128 * dtype_bytes
    # Double-buffered input AND output blocks => 4 live tile copies; use ~60% of VMEM.
    budget = (vmem_limit_bytes * 3) // 5 // 4
    rows = max(8, (budget // padded_row_bytes) // 8 * 8)
    if T >= 16:
        # Keep >= 2 grid steps so dimension_semantics=("parallel",) can split the
        # tiles across both v7x TensorCores.
        half = pl.cdiv(pl.cdiv(T, 2), 8) * 8
        rows = min(rows, half)
    if rows >= T:
        return T                       # single block equal to the full array dim
    return int(rows)                   # multiple of 8; last partial block is masked


def film(F_feats, X, params, *, t_tile=None, vmem_limit_bytes=DEFAULT_VMEM_LIMIT):
    """F_feats: (T, B, H); X: (B, H) -> (T, B, H). Matches the PyTorch FiLM forward."""
    T, B, H = F_feats.shape
    BH = B * H

    # Hoisted conditioning MLP (once per call, negligible vs. the streaming apply).
    g, beta = _film_mlp(X, params, H)
    g_flat = g.reshape(1, BH)
    beta_flat = beta.reshape(1, BH)

    # Free, contiguous collapse of the (B, H) minor dims into a single lane axis.
    f_flat = F_feats.reshape(T, BH)

    if t_tile is None:
        Tt = _pick_t_tile(T, BH, vmem_limit_bytes=vmem_limit_bytes,
                          dtype_bytes=F_feats.dtype.itemsize)
    else:
        Tt = T if t_tile >= T else max(8, (int(t_tile) // 8) * 8)
    grid = (pl.cdiv(T, Tt),)

    out_flat = pl.pallas_call(
        film_apply_kernel,
        out_shape=jax.ShapeDtypeStruct((T, BH), F_feats.dtype),
        grid=grid,
        in_specs=[
            pl.BlockSpec((Tt, BH), lambda t: (t, 0)),   # F tile (lane-dense)
            pl.BlockSpec((1, BH), lambda t: (0, 0)),    # g = 1 + gamma
            pl.BlockSpec((1, BH), lambda t: (0, 0)),    # beta
        ],
        out_specs=pl.BlockSpec((Tt, BH), lambda t: (t, 0)),
        compiler_params=pltpu.CompilerParams(
            dimension_semantics=("parallel",),
            vmem_limit_bytes=vmem_limit_bytes),
    )(f_flat, g_flat, beta_flat)

    return out_flat.reshape(T, B, H)


# ----------------------------------------------------------------------------
# Parameters (stored once in (in, out) layout, final layer pre-split gamma/beta).
# ----------------------------------------------------------------------------
def init_params(key, d_model):
    ks = jax.random.split(key, 6)
    s1 = 1.0 / jnp.sqrt(jnp.float32(d_model))
    s2 = 1.0 / jnp.sqrt(jnp.float32(MLP_HIDDEN))
    w3 = s2 * jax.random.normal(ks[4], (MLP_HIDDEN, 2 * d_model), jnp.float32)
    b3 = s2 * jax.random.normal(ks[5], (2 * d_model,), jnp.float32)
    return {
        "w1": s1 * jax.random.normal(ks[0], (d_model, MLP_HIDDEN), jnp.float32),
        "b1": s1 * jax.random.normal(ks[1], (MLP_HIDDEN,), jnp.float32),
        "w2": s2 * jax.random.normal(ks[2], (MLP_HIDDEN, MLP_HIDDEN), jnp.float32),
        "b2": s2 * jax.random.normal(ks[3], (MLP_HIDDEN,), jnp.float32),
        "w3_gamma": w3[:, :d_model],
        "b3_gamma": b3[:d_model],
        "w3_beta": w3[:, d_model:],
        "b3_beta": b3[d_model:],
    }


def film_ref(F_feats, X, params):
    """Pure-JAX reference matching the PyTorch forward."""
    h1 = jax.nn.relu(X @ params["w1"] + params["b1"])
    h2 = jax.nn.relu(h1 @ params["w2"] + params["b2"])
    gamma = h2 @ params["w3_gamma"] + params["b3_gamma"]
    beta = h2 @ params["w3_beta"] + params["b3_beta"]
    return F_feats * (gamma + 1.0)[None] + beta[None]


if __name__ == "__main__":
    key = jax.random.PRNGKey(0)
    k1, k2, k3 = jax.random.split(key, 3)

    # Primary small case: seq=8, batch=2, d_model=32.
    T, B, H = 8, 2, 32
    F_feats = jax.random.normal(k1, (T, B, H), jnp.float32)
    X = jax.random.normal(k2, (B, H), jnp.float32)
    params = init_params(k3, H)

    out = jax.jit(functools.partial(film))(F_feats, X, params)
    out = jax.block_until_ready(out)
    ref = film_ref(F_feats, X, params)
    assert out.shape == (T, B, H)
    assert bool(jnp.all(jnp.isfinite(out)))
    assert bool(jnp.allclose(out, ref, atol=1e-5, rtol=1e-5))

    # Secondary check: exercise the multi-step tiled grid path (T=32, Tt=8 -> grid=(4,)).
    T2 = 32
    F2 = jax.random.normal(jax.random.PRNGKey(1), (T2, B, H), jnp.float32)
    out2 = jax.block_until_ready(
        jax.jit(functools.partial(film, t_tile=8))(F2, X, params))
    ref2 = film_ref(F2, X, params)
    assert bool(jnp.allclose(out2, ref2, atol=1e-5, rtol=1e-5))

    print("KERNEL_OK")
</pallas_src>

<mosaic_0001>
module attributes {stable_mosaic.version = 11 : i64} {
  func.func @film_mlp_kernel(%arg0: memref<2x32xf32, #tpu.memory_space<vmem>>, %arg1: memref<32x128xf32, #tpu.memory_space<vmem>>, %arg2: memref<1x128xf32, #tpu.memory_space<vmem>>, %arg3: memref<128x128xf32, #tpu.memory_space<vmem>>, %arg4: memref<1x128xf32, #tpu.memory_space<vmem>>, %arg5: memref<128x32xf32, #tpu.memory_space<vmem>>, %arg6: memref<1x32xf32, #tpu.memory_space<vmem>>, %arg7: memref<128x32xf32, #tpu.memory_space<vmem>>, %arg8: memref<1x32xf32, #tpu.memory_space<vmem>>, %arg9: memref<2x32xf32, #tpu.memory_space<vmem>>, %arg10: memref<2x32xf32, #tpu.memory_space<vmem>>) attributes {dimension_semantics = [], scalar_prefetch = 0 : i64, scratch_operands = 0 : i64, tpu.core_type = #tpu.core_type<tc>} {
    %c0 = arith.constant 0 : index
    %c0_0 = arith.constant 0 : index
    %0 = vector.load %arg0[%c0, %c0_0] : memref<2x32xf32, #tpu.memory_space<vmem>>, vector<2x32xf32>
    %c0_1 = arith.constant 0 : index
    %c0_2 = arith.constant 0 : index
    %1 = vector.load %arg1[%c0_1, %c0_2] : memref<32x128xf32, #tpu.memory_space<vmem>>, vector<32x128xf32>
    %cst = arith.constant dense<0.000000e+00> : vector<2x128xf32>
    %2 = tpu.matmul %0, %1, %cst {dimension_numbers = #tpu.dot_dimension_numbers<[1], [0], [0], [1], [0, 0, 1, 1], [], []>} : vector<2x32xf32>, vector<32x128xf32>, vector<2x128xf32> -> vector<2x128xf32>
    %c0_3 = arith.constant 0 : index
    %c0_4 = arith.constant 0 : index
    %3 = vector.load %arg2[%c0_3, %c0_4] : memref<1x128xf32, #tpu.memory_space<vmem>>, vector<1x128xf32>
    %4 = vector.broadcast %3 : vector<1x128xf32> to vector<2x128xf32>
    %5 = arith.addf %2, %4 : vector<2x128xf32>
    %cst_5 = arith.constant 0.000000e+00 : f32
    %6 = vector.broadcast %cst_5 : f32 to vector<2x128xf32>
    %7 = arith.maximumf %5, %6 : vector<2x128xf32>
    %c0_6 = arith.constant 0 : index
    %c0_7 = arith.constant 0 : index
    %8 = vector.load %arg3[%c0_6, %c0_7] : memref<128x128xf32, #tpu.memory_space<vmem>>, vector<128x128xf32>
    %cst_8 = arith.constant dense<0.000000e+00> : vector<2x128xf32>
    %9 = tpu.matmul %7, %8, %cst_8 {dimension_numbers = #tpu.dot_dimension_numbers<[1], [0], [0], [1], [0, 0, 1, 1], [], []>} : vector<2x128xf32>, vector<128x128xf32>, vector<2x128xf32> -> vector<2x128xf32>
    %c0_9 = arith.constant 0 : index
    %c0_10 = arith.constant 0 : index
    %10 = vector.load %arg4[%c0_9, %c0_10] : memref<1x128xf32, #tpu.memory_space<vmem>>, vector<1x128xf32>
    %11 = vector.broadcast %10 : vector<1x128xf32> to vector<2x128xf32>
    %12 = arith.addf %9, %11 : vector<2x128xf32>
    %cst_11 = arith.constant 0.000000e+00 : f32
    %13 = vector.broadcast %cst_11 : f32 to vector<2x128xf32>
    %14 = arith.maximumf %12, %13 : vector<2x128xf32>
    %c0_12 = arith.constant 0 : index
    %c0_13 = arith.constant 0 : index
    %15 = vector.load %arg5[%c0_12, %c0_13] : memref<128x32xf32, #tpu.memory_space<vmem>>, vector<128x32xf32>
    %cst_14 = arith.constant dense<0.000000e+00> : vector<2x32xf32>
    %16 = tpu.matmul %14, %15, %cst_14 {dimension_numbers = #tpu.dot_dimension_numbers<[1], [0], [0], [1], [0, 0, 1, 1], [], []>} : vector<2x128xf32>, vector<128x32xf32>, vector<2x32xf32> -> vector<2x32xf32>
    %c0_15 = arith.constant 0 : index
    %c0_16 = arith.constant 0 : index
    %17 = vector.load %arg6[%c0_15, %c0_16] : memref<1x32xf32, #tpu.memory_space<vmem>>, vector<1x32xf32>
    %18 = vector.broadcast %17 : vector<1x32xf32> to vector<2x32xf32>
    %19 = arith.addf %16, %18 : vector<2x32xf32>
    %c0_17 = arith.constant 0 : index
    %c0_18 = arith.constant 0 : index
    %20 = vector.load %arg7[%c0_17, %c0_18] : memref<128x32xf32, #tpu.memory_space<vmem>>, vector<128x32xf32>
    %cst_19 = arith.constant dense<0.000000e+00> : vector<2x32xf32>
    %21 = tpu.matmul %14, %20, %cst_19 {dimension_numbers = #tpu.dot_dimension_numbers<[1], [0], [0], [1], [0, 0, 1, 1], [], []>} : vector<2x128xf32>, vector<128x32xf32>, vector<2x32xf32> -> vector<2x32xf32>
    %c0_20 = arith.constant 0 : index
    %c0_21 = arith.constant 0 : index
    %22 = vector.load %arg8[%c0_20, %c0_21] : memref<1x32xf32, #tpu.memory_space<vmem>>, vector<1x32xf32>
    %23 = vector.broadcast %22 : vector<1x32xf32> to vector<2x32xf32>
    %24 = arith.addf %21, %23 : vector<2x32xf32>
    %cst_22 = arith.constant 1.000000e+00 : f32
    %25 = vector.broadcast %cst_22 : f32 to vector<2x32xf32>
    %26 = arith.addf %19, %25 : vector<2x32xf32>
    %c0_23 = arith.constant 0 : index
    %c0_24 = arith.constant 0 : index
    %27 = vector.load %arg9[%c0_23, %c0_24] : memref<2x32xf32, #tpu.memory_space<vmem>>, vector<2x32xf32>
    tpu.vector_store %arg9[%c0_23, %c0_24], %26 {strides = array<i32>} : memref<2x32xf32, #tpu.memory_space<vmem>>, vector<2x32xf32>,
    %c0_25 = arith.constant 0 : index
    %c0_26 = arith.constant 0 : index
    %28 = vector.load %arg10[%c0_25, %c0_26] : memref<2x32xf32, #tpu.memory_space<vmem>>, vector<2x32xf32>
    tpu.vector_store %arg10[%c0_25, %c0_26], %24 {strides = array<i32>} : memref<2x32xf32, #tpu.memory_space<vmem>>, vector<2x32xf32>,
    return
  }
}

module attributes {stable_mosaic.version = 11 : i64} {
  func.func @film_apply_kernel(%arg0: i32, %arg1: memref<8x64xf32, #tpu.memory_space<vmem>>, %arg2: memref<1x64xf32, #tpu.memory_space<vmem>>, %arg3: memref<1x64xf32, #tpu.memory_space<vmem>>, %arg4: memref<8x64xf32, #tpu.memory_space<vmem>>) attributes {dimension_semantics = [#tpu.dimension_semantics<parallel>], iteration_bounds = array<i64: 1>, scalar_prefetch = 0 : i64, scratch_operands = 0 : i64, tpu.core_type = #tpu.core_type<tc>, window_params = [{transform_indices = @transform_0, window_bounds = array<i64: 8, 64>}, {pipeline_mode = #tpu.pipeline_mode<synchronous>, transform_indices = @transform_1, window_bounds = array<i64: 1, 64>}, {pipeline_mode = #tpu.pipeline_mode<synchronous>, transform_indices = @transform_2, window_bounds = array<i64: 1, 64>}, {transform_indices = @transform_3, window_bounds = array<i64: 8, 64>}]} {
    %c0 = arith.constant 0 : index
    %c0_0 = arith.constant 0 : index
    %0 = vector.load %arg1[%c0, %c0_0] : memref<8x64xf32, #tpu.memory_space<vmem>>, vector<8x64xf32>
    %c0_1 = arith.constant 0 : index
    %c0_2 = arith.constant 0 : index
    %1 = vector.load %arg2[%c0_1, %c0_2] : memref<1x64xf32, #tpu.memory_space<vmem>>, vector<1x64xf32>
    %2 = vector.broadcast %1 : vector<1x64xf32> to vector<8x64xf32>
    %3 = arith.mulf %0, %2 : vector<8x64xf32>
    %c0_3 = arith.constant 0 : index
    %c0_4 = arith.constant 0 : index
    %4 = vector.load %arg3[%c0_3, %c0_4] : memref<1x64xf32, #tpu.memory_space<vmem>>, vector<1x64xf32>
    %5 = vector.broadcast %4 : vector<1x64xf32> to vector<8x64xf32>
    %6 = arith.addf %3, %5 : vector<8x64xf32>
    %c0_5 = arith.constant 0 : index
    %c0_6 = arith.constant 0 : index
    %7 = vector.load %arg4[%c0_5, %c0_6] : memref<8x64xf32, #tpu.memory_space<vmem>>, vector<8x64xf32>
    tpu.vector_store %arg4[%c0_5, %c0_6], %6 {strides = array<i32>} : memref<8x64xf32, #tpu.memory_space<vmem>>, vector<8x64xf32>,
    return
  }
  func.func @transform_0(%arg0: i32) -> (i32, i32) {
    %c0_i32 = arith.constant 0 : i32
    %c0_i32_0 = arith.constant 0 : i32
    return %arg0, %c0_i32 : i32, i32
  }
  func.func @transform_1(%arg0: i32) -> (i32, i32) {
    %c0_i32 = arith.constant 0 : i32
    %c0_i32_0 = arith.constant 0 : i32
    %c0_i32_1 = arith.constant 0 : i32
    return %c0_i32, %c0_i32_0 : i32, i32
  }
  func.func @transform_2(%arg0: i32) -> (i32, i32) {
    %c0_i32 = arith.constant 0 : i32
    %c0_i32_0 = arith.constant 0 : i32
    %c0_i32_1 = arith.constant 0 : i32
    return %c0_i32, %c0_i32_0 : i32, i32
  }
  func.func @transform_3(%arg0: i32) -> (i32, i32) {
    %c0_i32 = arith.constant 0 : i32
    %c0_i32_0 = arith.constant 0 : i32
    return %arg0, %c0_i32 : i32, i32
  }
}

</mosaic_0001>

<bundles_post_ra>
// kernel: film.3
= control target key start
LH: loop header
LB: loop body
LE: loop exit
PB: predicated region body
PF: predicated region fallthrough
CT: control target
= control target key end

     0   :  { %vm31_vm0 = vcmask 523264   ;;  %s71_s0 = inlined_call_operand.vmem [shape: f32[8,64], index: 0, kind: input, shape index: {}]   ;;  %s72_s1 = inlined_call_operand.vmem [shape: f32[1,64], index: 1, kind: input, shape index: {}]   ;;  %s73_s2 = inlined_call_operand.vmem [shape: f32[1,64], index: 2, kind: input, shape index: {}]   ;;  %s74_s3 = inlined_call_operand.vmem [shape: f32[8,64], index: 3, kind: output, shape index: {}]  }
   0x1   :  { %v14_v0 = vld [vmem:[%s71_s0] sm:$0xff] }
   0x2   :  { %v37_v1 = vld [vmem:[%s72_s1] ss:$0 sm:$0xff] }
   0x3   :  { %v38_v2 = vld [vmem:[%s73_s2] ss:$0 sm:$0xff]  ;;  %v22_v3 = vmul.f32 %v37_v1, %v14_v0 }
   0x5   :  { %v30_v4 = vadd.f32 %v38_v2, %v22_v3 }
   0x7   :  { %32 = vst.msk [vmem:[%s74_s3] sm:$0xff] %vm31_vm0, %v30_v4 }

// kernel: film.2
= control target key start
LH: loop header
LB: loop body
LE: loop exit
PB: predicated region body
PF: predicated region fallthrough
CT: control target
= control target key end

     0   :  { %v592_v0 = vmov 0.0   ;;  %vm593_vm0 = vmmov 0   ;;  %vm46_vm1 = vcmask 261120   ;;  %vm402_vm2 = vcmask 254976   ;;  %s886_s1 = inlined_call_operand.vmem [shape: f32[32,128], index: 1, kind: input, shape index: {}]   ;;  %s887_s3 = inlined_call_operand.vmem [shape: f32[128,128], index: 3, kind: input, shape index: {}]   ;;  %s888_s0 = inlined_call_operand.vmem [shape: f32[2,32], index: 0, kind: input, shape index: {}]   ;;  %s889_s5 = inlined_call_operand.vmem [shape: f32[128,32], index: 5, kind: input, shape index: {}]   ;;  %s890_s2 = inlined_call_operand.vmem [shape: f32[1,128], index: 2, kind: input, shape index: {}]   ;;  %s891_s7 = inlined_call_operand.vmem [shape: f32[128,32], index: 7, kind: input, shape index: {}]   ;;  %s892_s4 = inlined_call_operand.vmem [shape: f32[1,128], index: 4, kind: input, shape index: {}]   ;;  %s893_s6 = inlined_call_operand.vmem [shape: f32[1,32], index: 6, kind: input, shape index: {}]   ;;  %s894_s8 = inlined_call_operand.vmem [shape: f32[1,32], index: 8, kind: input, shape index: {}]   ;;  %s895_s10 = inlined_call_operand.vmem [shape: f32[2,32], index: 10, kind: output, shape index: {1}]   ;;  %s896_s9 = inlined_call_operand.vmem [shape: f32[2,32], index: 9, kind: output, shape index: {0}]  }
   0x1   :  { %474 = vmatprep.subr.mxu0 %v592_v0  ;;  %v38_v1 = vld [vmem:[%s886_s1 + $0x18] sm:$0xff]  ;;  %v37_v2 = vld [vmem:[%s886_s1 + $0x10] sm:$0xff]  ;;  %482 = vmatprep.mubr.msk.f32.mxu0 %vm593_vm0, %v592_v0  ;;  %v36_v4 = vld [vmem:[%s886_s1 + $0x8] sm:$0xff] }
   0x2   :  { %475 = vmatpush3.msra.mxu0 %v38_v1  ;;  %485 = vmatprep.subr.mxu1 %v592_v0  ;;  %v136_v3 = vld [vmem:[%s887_s3 + $0x78] sm:$0xff]  ;;  %v135_v5 = vld [vmem:[%s887_s3 + $0x70] sm:$0xff]  ;;  %v134_v6 = vld [vmem:[%s887_s3 + $0x68] sm:$0xff] }
   0x3   :  { %476 = vmatprep.subr.mxu0 %v592_v0  ;;  %486 = vmatpush3.msra.mxu1 %v136_v3  ;;  %v35_v7 = vld [vmem:[%s886_s1] sm:$0xff]  ;;  %v132_v10 = vld [vmem:[%s887_s3 + $0x58] sm:$0xff]  ;;  %v131_v11 = vld [vmem:[%s887_s3 + $0x50] sm:$0xff] }
   0x4   :  { %477 = vmatpush3.msra.mxu0 %v37_v2  ;;  %487 = vmatprep.subr.mxu1 %v592_v0  ;;  %v34_v8 = vld [vmem:[%s888_s0] sm:$0x3]  ;;  %v130_v12 = vld [vmem:[%s887_s3 + $0x48] sm:$0xff]  ;;  %v128_v14 = vld [vmem:[%s887_s3 + $0x38] sm:$0xff] }
   0x5   :  { %478 = vmatprep.subr.mxu0 %v592_v0  ;;  %488 = vmatpush3.msra.mxu1 %v135_v5  ;;  %v133_v9 = vld [vmem:[%s887_s3 + $0x60] sm:$0xff]  ;;  %v127_v15 = vld [vmem:[%s887_s3 + $0x30] sm:$0xff]  ;;  %v126_v16 = vld [vmem:[%s887_s3 + $0x28] sm:$0xff] }
   0x6   :  { %479 = vmatpush3.msra.mxu0 %v36_v4  ;;  %489 = vmatprep.subr.mxu1 %v592_v0  ;;  %v129_v13 = vld [vmem:[%s887_s3 + $0x40] sm:$0xff]  ;;  %v124_v18 = vld [vmem:[%s887_s3 + $0x18] sm:$0xff]  ;;  %v123_v19 = vld [vmem:[%s887_s3 + $0x10] sm:$0xff] }
   0x7   :  { %480 = vmatprep.subr.mxu0 %v592_v0  ;;  %490 = vmatpush3.msra.mxu1 %v134_v6  ;;  %v125_v17 = vld [vmem:[%s887_s3 + $0x20] sm:$0xff]  ;;  %v122_v20 = vld [vmem:[%s887_s3 + $0x8] sm:$0xff]  ;;  %v230_v22 = vld [vmem:[%s889_s5 + $0x78] sm:$0xff] }
   0x8   :  { %481 = vmatpush3.msra.mxu0 %v35_v7  ;;  %491 = vmatprep.subr.mxu1 %v592_v0  ;;  %v121_v21 = vld [vmem:[%s887_s3] sm:$0xff]  ;;  %v229_v23 = vld [vmem:[%s889_s5 + $0x70] sm:$0xff]  ;;  %v228_v24 = vld [vmem:[%s889_s5 + $0x68] sm:$0xff] }
   0x9   :  { %483 = vmatmul.mubr.msk.f32.vlgmr.msra.gmra.mxu0 %vm46_vm1, %v34_v8  ;;  %492 = vmatpush3.msra.mxu1 %v133_v9  ;;  %v227_v25 = vld [vmem:[%s889_s5 + $0x60] sm:$0xff]  ;;  %v226_v26 = vld [vmem:[%s889_s5 + $0x58] sm:$0xff]  ;;  %v225_v27 = vld [vmem:[%s889_s5 + $0x50] sm:$0xff] }
   0xa   :  { %493 = vmatprep.subr.mxu1 %v592_v0  ;;  %517 = vmatprep.mubr.msk.f32.mxu1 %vm593_vm0, %v592_v0  ;;  %v224_v28 = vld [vmem:[%s889_s5 + $0x48] sm:$0xff]  ;;  %v223_v29 = vld [vmem:[%s889_s5 + $0x40] sm:$0xff]  ;;  %v222_v30 = vld [vmem:[%s889_s5 + $0x38] sm:$0xff] }
   0xb   :  { %494 = vmatpush3.msra.mxu1 %v132_v10  ;;  %520 = vmatprep.subr.mxu0 %v592_v0  ;;  %v221_v31 = vld [vmem:[%s889_s5 + $0x30] sm:$0xff]  ;;  %v220_v32 = vld [vmem:[%s889_s5 + $0x28] sm:$0xff]  ;;  %v219_v33 = vld [vmem:[%s889_s5 + $0x20] sm:$0xff] }
   0xc   :  { %495 = vmatprep.subr.mxu1 %v592_v0  ;;  %552 = vmatprep.mubr.msk.f32.mxu0 %vm593_vm0, %v592_v0  ;;  %v218_v34 = vld [vmem:[%s889_s5 + $0x18] sm:$0xff]  ;;  %v413_v35 = vld [vmem:[%s890_s2] ss:$0 sm:$0xff]  ;;  %v322_v41 = vld [vmem:[%s891_s7 + $0x70] sm:$0xff] }
   0xd   :  { %496 = vmatpush3.msra.mxu1 %v131_v11  ;;  %521 = vmatpush3.msra.mxu0 %v230_v22  ;;  %v323_v40 = vld [vmem:[%s891_s7 + $0x78] sm:$0xff]  ;;  %v321_v42 = vld [vmem:[%s891_s7 + $0x68] sm:$0xff]  ;;  %v320_v43 = vld [vmem:[%s891_s7 + $0x60] sm:$0xff] }
   0xe   :  { %497 = vmatprep.subr.mxu1 %v592_v0  ;;  %522 = vmatprep.subr.mxu0 %v592_v0  ;;  %v319_v44 = vld [vmem:[%s891_s7 + $0x58] sm:$0xff]  ;;  %v318_v45 = vld [vmem:[%s891_s7 + $0x50] sm:$0xff]  ;;  %v317_v46 = vld [vmem:[%s891_s7 + $0x48] sm:$0xff] }
   0xf   :  { %498 = vmatpush3.msra.mxu1 %v130_v12  ;;  %523 = vmatpush3.msra.mxu0 %v229_v23  ;;  %v316_v47 = vld [vmem:[%s891_s7 + $0x40] sm:$0xff]  ;;  %v315_v48 = vld [vmem:[%s891_s7 + $0x38] sm:$0xff]  ;;  %v314_v49 = vld [vmem:[%s891_s7 + $0x30] sm:$0xff] }
  0x10   :  { %499 = vmatprep.subr.mxu1 %v592_v0  ;;  %524 = vmatprep.subr.mxu0 %v592_v0  ;;  %v313_v50 = vld [vmem:[%s891_s7 + $0x28] sm:$0xff]  ;;  %v312_v51 = vld [vmem:[%s891_s7 + $0x20] sm:$0xff]  ;;  %v311_v52 = vld [vmem:[%s891_s7 + $0x18] sm:$0xff] }
  0x11   :  { %500 = vmatpush3.msra.mxu1 %v129_v13  ;;  %525 = vmatpush3.msra.mxu0 %v228_v24  ;;  %v217_v53 = vld [vmem:[%s889_s5 + $0x10] sm:$0xff]  ;;  %v216_v55 = vld [vmem:[%s889_s5 + $0x8] sm:$0xff]  ;;  %v215_v57 = vld [vmem:[%s889_s5] sm:$0xff] }
  0x12   :  { %501 = vmatprep.subr.mxu1 %v592_v0  ;;  %526 = vmatprep.subr.mxu0 %v592_v0  ;;  %v310_v54 = vld [vmem:[%s891_s7 + $0x10] sm:$0xff]  ;;  %v309_v56 = vld [vmem:[%s891_s7 + $0x8] sm:$0xff]  ;;  %v308_v58 = vld [vmem:[%s891_s7] sm:$0xff] }
  0x13   :  { %502 = vmatpush3.msra.mxu1 %v128_v14  ;;  %527 = vmatpush3.msra.mxu0 %v227_v25  ;;  %v415_v59 = vld [vmem:[%s892_s4] ss:$0 sm:$0xff] }
  0x14   :  { %503 = vmatprep.subr.mxu1 %v592_v0  ;;  %528 = vmatprep.subr.mxu0 %v592_v0  ;;  %v417_v1 = vld [vmem:[%s894_s8] ss:$0 sm:$0xff] }
  0x15   :  { %504 = vmatpush3.msra.mxu1 %v127_v15  ;;  %529 = vmatpush3.msra.mxu0 %v226_v26 }
  0x16   :  { %505 = vmatprep.subr.mxu1 %v592_v0  ;;  %530 = vmatprep.subr.mxu0 %v592_v0 }
  0x17   :  { %506 = vmatpush3.msra.mxu1 %v126_v16  ;;  %531 = vmatpush3.msra.mxu0 %v225_v27 }
  0x18   :  { %507 = vmatprep.subr.mxu1 %v592_v0  ;;  %532 = vmatprep.subr.mxu0 %v592_v0 }
  0x19   :  { %508 = vmatpush3.msra.mxu1 %v125_v17  ;;  %533 = vmatpush3.msra.mxu0 %v224_v28 }
  0x1a   :  { %509 = vmatprep.subr.mxu1 %v592_v0  ;;  %534 = vmatprep.subr.mxu0 %v592_v0 }
  0x1b   :  { %510 = vmatpush3.msra.mxu1 %v124_v18  ;;  %535 = vmatpush3.msra.mxu0 %v223_v29 }
  0x1c   :  { %511 = vmatprep.subr.mxu1 %v592_v0  ;;  %536 = vmatprep.subr.mxu0 %v592_v0 }
  0x1d   :  { %512 = vmatpush3.msra.mxu1 %v123_v19  ;;  %537 = vmatpush3.msra.mxu0 %v222_v30 }
  0x1e   :  { %513 = vmatprep.subr.mxu1 %v592_v0  ;;  %538 = vmatprep.subr.mxu0 %v592_v0 }
  0x1f   :  { %514 = vmatpush3.msra.mxu1 %v122_v20  ;;  %539 = vmatpush3.msra.mxu0 %v221_v31 }
  0x20   :  { %515 = vmatprep.subr.mxu1 %v592_v0  ;;  %540 = vmatprep.subr.mxu0 %v592_v0 }
  0x21   :  { %516 = vmatpush3.msra.mxu1 %v121_v21  ;;  %541 = vmatpush3.msra.mxu0 %v220_v32 }
  0x22   :  { %555 = vmatprep.subr.mxu1 %v592_v0  ;;  %542 = vmatprep.subr.mxu0 %v592_v0 }
  0x23   :  { %543 = vmatpush3.msra.mxu0 %v219_v33 }
  0x24   :  { %544 = vmatprep.subr.mxu0 %v592_v0 }
  0x25   :  { %545 = vmatpush3.msra.mxu0 %v218_v34 }
  0x26   :  { %546 = vmatprep.subr.mxu0 %v592_v0 }
  0x27   :  { %547 = vmatpush3.msra.mxu0 %v217_v53 }
  0x28   :  { %548 = vmatprep.subr.mxu0 %v592_v0 }
  0x29   :  { %549 = vmatpush3.msra.mxu0 %v216_v55 }
  0x2a   :  { %550 = vmatprep.subr.mxu0 %v592_v0 }
  0x2b   :  { %551 = vmatpush3.msra.mxu0 %v215_v57 }
  0xc9   :  { %v116_v36 = vpop.f32.mrf.mxu0 }
  0xca   :  { %v117_v37 = vadd.f32 %v413_v35, %v116_v36 }
  0xcb   :  { %v484_v38 = vpop.f32.mrf.mxu0 }
  0xcc   :  { %v120_v39 = vmax.f32 %v117_v37, 0.0 }
  0xce   :  { %518 = vmatmul.mubr.f32.vlgmr.msra.gmra.mxu1 %v120_v39 }
  0xcf   :  { %556 = vmatpush3.msra.mxu1 %v323_v40  ;;  %587 = vmatprep.mubr.msk.f32.mxu1 %vm593_vm0, %v592_v0 }
  0xd0   :  { %557 = vmatprep.subr.mxu1 %v592_v0 }
  0xd1   :  { %558 = vmatpush3.msra.mxu1 %v322_v41 }
  0xd2   :  { %559 = vmatprep.subr.mxu1 %v592_v0 }
  0xd3   :  { %560 = vmatpush3.msra.mxu1 %v321_v42 }
  0xd4   :  { %561 = vmatprep.subr.mxu1 %v592_v0 }
  0xd5   :  { %562 = vmatpush3.msra.mxu1 %v320_v43 }
  0xd6   :  { %563 = vmatprep.subr.mxu1 %v592_v0 }
  0xd7   :  { %564 = vmatpush3.msra.mxu1 %v319_v44 }
  0xd8   :  { %565 = vmatprep.subr.mxu1 %v592_v0 }
  0xd9   :  { %566 = vmatpush3.msra.mxu1 %v318_v45 }
  0xda   :  { %567 = vmatprep.subr.mxu1 %v592_v0 }
  0xdb   :  { %568 = vmatpush3.msra.mxu1 %v317_v46 }
  0xdc   :  { %569 = vmatprep.subr.mxu1 %v592_v0 }
  0xdd   :  { %570 = vmatpush3.msra.mxu1 %v316_v47 }
  0xde   :  { %571 = vmatprep.subr.mxu1 %v592_v0 }
  0xdf   :  { %572 = vmatpush3.msra.mxu1 %v315_v48 }
  0xe0   :  { %573 = vmatprep.subr.mxu1 %v592_v0 }
  0xe1   :  { %574 = vmatpush3.msra.mxu1 %v314_v49 }
  0xe2   :  { %575 = vmatprep.subr.mxu1 %v592_v0 }
  0xe3   :  { %576 = vmatpush3.msra.mxu1 %v313_v50 }
  0xe4   :  { %577 = vmatprep.subr.mxu1 %v592_v0 }
  0xe5   :  { %578 = vmatpush3.msra.mxu1 %v312_v51 }
  0xe6   :  { %579 = vmatprep.subr.mxu1 %v592_v0 }
  0xe7   :  { %580 = vmatpush3.msra.mxu1 %v311_v52 }
  0xe8   :  { %581 = vmatprep.subr.mxu1 %v592_v0 }
  0xe9   :  { %582 = vmatpush3.msra.mxu1 %v310_v54 }
  0xea   :  { %583 = vmatprep.subr.mxu1 %v592_v0 }
  0xeb   :  { %584 = vmatpush3.msra.mxu1 %v309_v56 }
  0xec   :  { %585 = vmatprep.subr.mxu1 %v592_v0  ;;  %v416_v0 = vld [vmem:[%s893_s6] ss:$0 sm:$0xff] }
  0xed   :  { %586 = vmatpush3.msra.mxu1 %v308_v58 }
 0x18e   :  { %v210_v60 = vpop.f32.mrf.mxu1 }
 0x18f   :  { %v211_v61 = vadd.f32 %v415_v59, %v210_v60 }
 0x190   :  { %v519_v62 = vpop.f32.mrf.mxu1 }
 0x191   :  { %v214_v63 = vmax.f32 %v211_v61, 0.0 }
 0x193   :  { %553 = vmatmul.mubr.f32.vlgmr.msra.gmra.mxu0 %v214_v63  ;;  %588 = vmatmul.mubr.f32.vlgmr.msra.gmra.mxu1 %v214_v63 }
 0x253   :  { %v304_v2 = vpop.f32.mrf.mxu0  ;;  %v397_v3 = vpop.f32.mrf.mxu1 }
 0x254   :  { %v305_v4 = vadd.f32 %v416_v0, %v304_v2  ;;  %v398_v5 = vadd.f32 %v417_v1, %v397_v3 }
 0x255   :  { %v554_v6 = vpop.f32.mrf.mxu0  ;;  %v589_v7 = vpop.f32.mrf.mxu1 }
 0x256   :  { %v401_v8 = vadd.f32 1.0, %v305_v4  ;;  %404 = vst.msk [vmem:[%s895_s10] sm:$0x3] %vm402_vm2, %v398_v5 }
 0x258   :  { %403 = vst.msk [vmem:[%s896_s9] sm:$0x3] %vm402_vm2, %v401_v8 }

</bundles_post_ra>
